<compile_context>
chip_gen: v7x
topology: tpu7x:2x2x1
jax: 0.10.0
libtpu: 0.0.40
codegen_flags: <defaults>
</compile_context>

<pallas_src>
import jax
import jax.numpy as jnp
from jax.experimental import pallas as pl
from jax.experimental.pallas import tpu as pltpu

LANE = 128    # lane width: every feature dim is zero-padded to this
B_PAD = 16    # graph/batch rows padded to one bf16 packed sublane tile (16,128)
NP = 128      # padded node count (rows of x/A, lanes of A's contraction and P)

# Static sublane offsets inside the packed slabs -------------------------------
X_OFF = 0
A_OFF = NP
P_OFF = 2 * NP
E_OFF = 2 * NP + B_PAD
ACT_ROWS = 2 * NP + 2 * B_PAD          # 288

B1_OFF = 0
B2_OFF = NP
B3_OFF = 2 * NP
W4_OFF = 2 * NP + B_PAD
B4_OFF = 2 * NP + 2 * B_PAD
BSLAB_ROWS = 2 * NP + 3 * B_PAD        # 304


# --------------------------------------------------------------------------- #
# Kernel
# --------------------------------------------------------------------------- #
def net_kernel(act_ref, w_ref, b_ref, out_ref):
    f32, bf16 = jnp.float32, jnp.bfloat16

    # Static, tile-aligned views into the three packed slabs (one DMA each).
    x = act_ref[X_OFF:X_OFF + NP, :]          # (128,128) bf16  node features
    a = act_ref[A_OFF:A_OFF + NP, :]          # (128,128) bf16  norm*edge_attr adjacency
    p = act_ref[P_OFF:P_OFF + B_PAD, :]       # ( 16,128) bf16  mean-pool matrix
    e = act_ref[E_OFF:E_OFF + B_PAD, :]       # ( 16,128) bf16  energy (25 live lanes)

    w1 = w_ref[0 * LANE:1 * LANE, :]          # (128,128) in_pad  -> hid_pad
    w2 = w_ref[1 * LANE:2 * LANE, :]          # (128,128) hid_pad -> out_pad
    w3 = w_ref[2 * LANE:4 * LANE, :]          # (256,128) fused [pooled-part; energy-part]

    b1 = b_ref[B1_OFF:B1_OFF + NP, :]         # pre-replicated over node rows
    b2 = b_ref[B2_OFF:B2_OFF + NP, :]
    b3 = b_ref[B3_OFF:B3_OFF + B_PAD, :]      # pre-replicated over graph rows
    w4 = b_ref[W4_OFF:W4_OFF + B_PAD, :]      # final Linear weight as a lane row
    b4 = b_ref[B4_OFF:B4_OFF + B_PAD, :]      # final bias scalar in every lane

    # --- MPNN.lin : Linear -> ReLU -> (Dropout=id) -> Linear -----------------
    h = jnp.maximum(jnp.dot(x, w1, preferred_element_type=f32) + b1, 0.0)
    x_lin = jnp.dot(h.astype(bf16), w2, preferred_element_type=f32) + b2

    # --- message passing: agg[i] = sum_e norm[e]*edge_attr[e]*x_lin[src[e]] --
    agg = jnp.dot(a, x_lin.astype(bf16), preferred_element_type=f32)

    # --- Net head: ReLU -> global_mean_pool -> cat([pooled, e]) @ W3 ---------
    r = jnp.maximum(agg, 0.0)
    pooled = jnp.dot(p, r.astype(bf16), preferred_element_type=f32)
    # cat of two full 128-lane vregs -> single K=256 MXU push against fused W3.
    cat = jnp.concatenate([pooled.astype(bf16), e], axis=-1)       # (16, 256)
    z = jnp.maximum(jnp.dot(cat, w3, preferred_element_type=f32) + b3, 0.0)
    # Dropout(0.5) is identity in eval mode.

    # --- final Linear(d3 -> 1): only one live output column ------------------
    # VPU multiply + cross-lane (XLU) reduce instead of a 1-live-column MXU
    # matmul; result broadcast across lanes -> full unmasked (16,128) store.
    s = jnp.sum(z * w4, axis=-1, keepdims=True)                    # (16, 1)
    out_ref[...] = jnp.broadcast_to(s, out_ref.shape) + b4


def net_forward(act_slab, wslab, bslab, num_graphs):
    """Single-shot Pallas call; all operands are small and VMEM-resident."""
    vmem = pl.BlockSpec(memory_space=pltpu.MemorySpace.VMEM)
    out = pl.pallas_call(
        net_kernel,
        out_shape=jax.ShapeDtypeStruct((B_PAD, LANE), jnp.float32),
        in_specs=[vmem, vmem, vmem],
        out_specs=vmem,
        compiler_params=pltpu.CompilerParams(
            vmem_limit_bytes=32 * 1024 * 1024),   # explicit headroom (v5e default ~16 MiB)
    )(act_slab, wslab, bslab)
    return out[:num_graphs, :1]


# --------------------------------------------------------------------------- #
# Host-side glue: graph operators, parameter/activation packing
# --------------------------------------------------------------------------- #
def build_graph_operators(edge_index, edge_attr, batch, num_nodes, num_graphs):
    """Dense message-passing matrix A and mean-pool matrix P (built once, f32)."""
    N = num_nodes
    row, col = edge_index[0], edge_index[1]
    # add_self_loops(edge_index, edge_attr): self-loop edge weight fill = 1.0
    loop = jnp.arange(N, dtype=row.dtype)
    row = jnp.concatenate([row, loop])
    col = jnp.concatenate([col, loop])
    ea = jnp.concatenate([edge_attr, jnp.ones((N,), edge_attr.dtype)])
    # Matches the torch module literally: deg = degree(row); norm = d^-.5[row]*d^-.5[col]
    deg = jnp.zeros((N,), jnp.float32).at[row].add(1.0)
    dis = deg ** -0.5
    w = dis[row] * dis[col] * ea
    # messages flow source (row) -> target (col); aggregation target is col
    A = jnp.zeros((N, N), jnp.float32).at[col, row].add(w)
    # mean pooling matrix
    onehot = (batch[None, :] == jnp.arange(num_graphs)[:, None]).astype(jnp.float32)
    counts = jnp.maximum(onehot.sum(axis=1, keepdims=True), 1.0)
    P = onehot / counts
    return A, P


def init_params(key, input_dim, hidden_dim, output_dim):
    d3 = output_dim + 25
    ks = jax.random.split(key, 8)

    def lin(kw, kb, fan_in, fan_out):
        bound = 1.0 / jnp.sqrt(fan_in)
        w = jax.random.uniform(kw, (fan_in, fan_out), jnp.float32, -bound, bound)
        b = jax.random.uniform(kb, (1, fan_out), jnp.float32, -bound, bound)
        return w, b

    w1, b1 = lin(ks[0], ks[1], input_dim, hidden_dim)
    w2, b2 = lin(ks[2], ks[3], hidden_dim, output_dim)
    w3, b3 = lin(ks[4], ks[5], d3, d3)
    w4, b4 = lin(ks[6], ks[7], d3, 1)
    return {"w1": w1, "b1": b1, "w2": w2, "b2": b2,
            "w3": w3, "b3": b3, "w4": w4, "b4": b4}


def _pad2(a, rows, cols):
    return jnp.zeros((rows, cols), a.dtype).at[:a.shape[0], :a.shape[1]].set(a)


def _rep_row(vec, rows):
    """Lane-pad a 1-D vector and replicate it across `rows` sublanes (f32)."""
    row = jnp.zeros((1, LANE), jnp.float32).at[0, :vec.shape[0]].set(vec)
    return jnp.broadcast_to(row, (rows, LANE))


def pack_params(params, output_dim):
    """One bf16 weight slab (w1 | w2 | fused W3) + one f32 bias/vector slab."""
    wslab = jnp.concatenate([
        _pad2(params["w1"], LANE, LANE),
        _pad2(params["w2"], LANE, LANE),
        _pad2(params["w3"][:output_dim, :], LANE, LANE),   # pooled part of cat
        _pad2(params["w3"][output_dim:, :], LANE, LANE),   # energy part of cat
    ], axis=0).astype(jnp.bfloat16)                        # (512, 128)

    bslab = jnp.concatenate([
        _rep_row(params["b1"][0], NP),                     # + to (NP,128) activations
        _rep_row(params["b2"][0], NP),
        _rep_row(params["b3"][0], B_PAD),                  # + to (B_PAD,128) activations
        _rep_row(params["w4"][:, 0], B_PAD),               # final weight as a lane row
        jnp.broadcast_to(params["b4"], (B_PAD, LANE)),     # final bias scalar everywhere
    ], axis=0)                                             # (304, 128) f32
    assert wslab.shape == (4 * LANE, LANE)
    assert bslab.shape == (BSLAB_ROWS, LANE)
    return wslab, bslab


def pack_activations(x, A, P, e):
    """Per-call data packed into ONE sublane-stacked bf16 slab (one DMA)."""
    N = x.shape[0]
    B = P.shape[0]
    assert N <= NP and B <= B_PAD, "grid-tile the A path for larger graphs (see TODO)"
    act = jnp.concatenate([
        _pad2(x, NP, LANE),          # node features
        _pad2(A, NP, NP),            # adjacency (NP == LANE)
        _pad2(P, B_PAD, NP),         # mean-pool matrix
        _pad2(e, B_PAD, LANE),       # energies
    ], axis=0).astype(jnp.bfloat16)  # (288, 128)
    assert act.shape == (ACT_ROWS, LANE)
    return act


# --------------------------------------------------------------------------- #
# Reference (plain XLA, mirrors the kernel math exactly: bf16 operands, f32 acc)
# --------------------------------------------------------------------------- #
def reference_forward(act_slab, wslab, bslab, num_graphs):
    f32, bf16 = jnp.float32, jnp.bfloat16
    dot = lambda a, b: jnp.dot(a, b, preferred_element_type=f32)
    x = act_slab[X_OFF:X_OFF + NP]
    a = act_slab[A_OFF:A_OFF + NP]
    p = act_slab[P_OFF:P_OFF + B_PAD]
    e = act_slab[E_OFF:E_OFF + B_PAD]
    w1, w2 = wslab[0:LANE], wslab[LANE:2 * LANE]
    w3 = wslab[2 * LANE:4 * LANE]
    b1 = bslab[B1_OFF:B1_OFF + NP]
    b2 = bslab[B2_OFF:B2_OFF + NP]
    b3 = bslab[B3_OFF:B3_OFF + B_PAD]
    w4 = bslab[W4_OFF:W4_OFF + B_PAD]
    b4 = bslab[B4_OFF:B4_OFF + B_PAD]

    h = jnp.maximum(dot(x, w1) + b1, 0.0)
    x_lin = dot(h.astype(bf16), w2) + b2
    r = jnp.maximum(dot(a, x_lin.astype(bf16)), 0.0)
    pooled = dot(p, r.astype(bf16))
    cat = jnp.concatenate([pooled.astype(bf16), e], axis=-1)
    z = jnp.maximum(dot(cat, w3) + b3, 0.0)
    s = jnp.sum(z * w4, axis=-1, keepdims=True)
    out = jnp.broadcast_to(s, (B_PAD, LANE)) + b4
    return out[:num_graphs, :1]


# --------------------------------------------------------------------------- #
if __name__ == "__main__":
    key = jax.random.PRNGKey(0)
    k_x, k_src, k_dst, k_ea, k_energy, k_param = jax.random.split(key, 6)

    # small shapes consistent with the module
    input_dim, hidden_dim, output_dim = 8, 32, 16
    N, B, E = 16, 2, 24  # 16 nodes split into 2 graphs of 8, 24 edges

    x = jax.random.normal(k_x, (N, input_dim), jnp.float32)
    src = jax.random.randint(k_src, (E,), 0, N, jnp.int32)
    dst = jax.random.randint(k_dst, (E,), 0, N, jnp.int32)
    edge_index = jnp.stack([src, dst], axis=0)
    edge_attr = jax.random.uniform(k_ea, (E,), jnp.float32)
    batch = jnp.concatenate([jnp.zeros((N // 2,), jnp.int32),
                             jnp.ones((N - N // 2,), jnp.int32)])
    energy = jax.random.normal(k_energy, (B * 25,), jnp.float32)
    e = energy.reshape(B, 25)

    # one-time host-side preparation (hoisted out of the per-call path)
    A, P = build_graph_operators(edge_index, edge_attr, batch, N, B)
    params = init_params(k_param, input_dim, hidden_dim, output_dim)
    wslab, bslab = pack_params(params, output_dim)
    act_slab = pack_activations(x, A, P, e)

    out = net_forward(act_slab, wslab, bslab, B)
    out = jax.block_until_ready(out)

    ref = reference_forward(act_slab, wslab, bslab, B)
    assert out.shape == (B, 1), out.shape
    assert jnp.allclose(out, ref, atol=2e-3, rtol=2e-3), (out, ref)

    print("KERNEL_OK")
</pallas_src>

<mosaic_0001>
module attributes {stable_mosaic.version = 11 : i64} {
  func.func @net_kernel(%arg0: memref<288x128xbf16, #tpu.memory_space<vmem>>, %arg1: memref<512x128xbf16, #tpu.memory_space<vmem>>, %arg2: memref<304x128xf32, #tpu.memory_space<vmem>>, %arg3: memref<16x128xf32, #tpu.memory_space<vmem>>) attributes {dimension_semantics = [], scalar_prefetch = 0 : i64, scratch_operands = 0 : i64, tpu.core_type = #tpu.core_type<tc>} {
    %c0 = arith.constant 0 : index
    %c0_0 = arith.constant 0 : index
    %0 = vector.load %arg0[%c0, %c0_0] : memref<288x128xbf16, #tpu.memory_space<vmem>>, vector<128x128xbf16>
    %c128 = arith.constant 128 : index
    %c0_1 = arith.constant 0 : index
    %1 = vector.load %arg0[%c128, %c0_1] : memref<288x128xbf16, #tpu.memory_space<vmem>>, vector<128x128xbf16>
    %c256 = arith.constant 256 : index
    %c0_2 = arith.constant 0 : index
    %2 = vector.load %arg0[%c256, %c0_2] : memref<288x128xbf16, #tpu.memory_space<vmem>>, vector<16x128xbf16>
    %c272 = arith.constant 272 : index
    %c0_3 = arith.constant 0 : index
    %3 = vector.load %arg0[%c272, %c0_3] : memref<288x128xbf16, #tpu.memory_space<vmem>>, vector<16x128xbf16>
    %c0_4 = arith.constant 0 : index
    %c0_5 = arith.constant 0 : index
    %4 = vector.load %arg1[%c0_4, %c0_5] : memref<512x128xbf16, #tpu.memory_space<vmem>>, vector<128x128xbf16>
    %c128_6 = arith.constant 128 : index
    %c0_7 = arith.constant 0 : index
    %5 = vector.load %arg1[%c128_6, %c0_7] : memref<512x128xbf16, #tpu.memory_space<vmem>>, vector<128x128xbf16>
    %c256_8 = arith.constant 256 : index
    %c0_9 = arith.constant 0 : index
    %6 = vector.load %arg1[%c256_8, %c0_9] : memref<512x128xbf16, #tpu.memory_space<vmem>>, vector<256x128xbf16>
    %c0_10 = arith.constant 0 : index
    %c0_11 = arith.constant 0 : index
    %7 = vector.load %arg2[%c0_10, %c0_11] : memref<304x128xf32, #tpu.memory_space<vmem>>, vector<128x128xf32>
    %c128_12 = arith.constant 128 : index
    %c0_13 = arith.constant 0 : index
    %8 = vector.load %arg2[%c128_12, %c0_13] : memref<304x128xf32, #tpu.memory_space<vmem>>, vector<128x128xf32>
    %c256_14 = arith.constant 256 : index
    %c0_15 = arith.constant 0 : index
    %9 = vector.load %arg2[%c256_14, %c0_15] : memref<304x128xf32, #tpu.memory_space<vmem>>, vector<16x128xf32>
    %c272_16 = arith.constant 272 : index
    %c0_17 = arith.constant 0 : index
    %10 = vector.load %arg2[%c272_16, %c0_17] : memref<304x128xf32, #tpu.memory_space<vmem>>, vector<16x128xf32>
    %c288 = arith.constant 288 : index
    %c0_18 = arith.constant 0 : index
    %11 = vector.load %arg2[%c288, %c0_18] : memref<304x128xf32, #tpu.memory_space<vmem>>, vector<16x128xf32>
    %cst = arith.constant dense<0.000000e+00> : vector<128x128xf32>
    %12 = tpu.matmul %0, %4, %cst {dimension_numbers = #tpu.dot_dimension_numbers<[1], [0], [0], [1], [0, 0, 1, 1], [], []>} : vector<128x128xbf16>, vector<128x128xbf16>, vector<128x128xf32> -> vector<128x128xf32>
    %13 = arith.addf %12, %7 : vector<128x128xf32>
    %cst_19 = arith.constant 0.000000e+00 : f32
    %14 = vector.broadcast %cst_19 : f32 to vector<128x128xf32>
    %15 = arith.maximumf %13, %14 : vector<128x128xf32>
    %16 = arith.truncf %15 : vector<128x128xf32> to vector<128x128xbf16>
    %cst_20 = arith.constant dense<0.000000e+00> : vector<128x128xf32>
    %17 = tpu.matmul %16, %5, %cst_20 {dimension_numbers = #tpu.dot_dimension_numbers<[1], [0], [0], [1], [0, 0, 1, 1], [], []>} : vector<128x128xbf16>, vector<128x128xbf16>, vector<128x128xf32> -> vector<128x128xf32>
    %18 = arith.addf %17, %8 : vector<128x128xf32>
    %19 = arith.truncf %18 : vector<128x128xf32> to vector<128x128xbf16>
    %cst_21 = arith.constant dense<0.000000e+00> : vector<128x128xf32>
    %20 = tpu.matmul %1, %19, %cst_21 {dimension_numbers = #tpu.dot_dimension_numbers<[1], [0], [0], [1], [0, 0, 1, 1], [], []>} : vector<128x128xbf16>, vector<128x128xbf16>, vector<128x128xf32> -> vector<128x128xf32>
    %cst_22 = arith.constant 0.000000e+00 : f32
    %21 = vector.broadcast %cst_22 : f32 to vector<128x128xf32>
    %22 = arith.maximumf %20, %21 : vector<128x128xf32>
    %23 = arith.truncf %22 : vector<128x128xf32> to vector<128x128xbf16>
    %cst_23 = arith.constant dense<0.000000e+00> : vector<16x128xf32>
    %24 = tpu.matmul %2, %23, %cst_23 {dimension_numbers = #tpu.dot_dimension_numbers<[1], [0], [0], [1], [0, 0, 1, 1], [], []>} : vector<16x128xbf16>, vector<128x128xbf16>, vector<16x128xf32> -> vector<16x128xf32>
    %25 = arith.truncf %24 : vector<16x128xf32> to vector<16x128xbf16>
    %26 = tpu.concatenate %25, %3 in 1 : vector<16x128xbf16>, vector<16x128xbf16> -> vector<16x256xbf16>
    %cst_24 = arith.constant dense<0.000000e+00> : vector<16x128xf32>
    %27 = tpu.matmul %26, %6, %cst_24 {dimension_numbers = #tpu.dot_dimension_numbers<[1], [0], [0], [1], [0, 0, 1, 1], [], []>} : vector<16x256xbf16>, vector<256x128xbf16>, vector<16x128xf32> -> vector<16x128xf32>
    %28 = arith.addf %27, %9 : vector<16x128xf32>
    %cst_25 = arith.constant 0.000000e+00 : f32
    %29 = vector.broadcast %cst_25 : f32 to vector<16x128xf32>
    %30 = arith.maximumf %28, %29 : vector<16x128xf32>
    %31 = arith.mulf %30, %10 : vector<16x128xf32>
    %cst_26 = arith.constant dense<0.000000e+00> : vector<16xf32>
    %32 = vector.multi_reduction <add>, %31, %cst_26 [1] : vector<16x128xf32> to vector<16xf32>
    %33 = vector.shape_cast %32 : vector<16xf32> to vector<16x1xf32>
    %34 = vector.shape_cast %33 : vector<16x1xf32> to vector<16x1xf32>
    %35 = vector.broadcast %34 : vector<16x1xf32> to vector<16x128xf32>
    %36 = arith.addf %35, %11 : vector<16x128xf32>
    %c0_27 = arith.constant 0 : index
    %c0_28 = arith.constant 0 : index
    %37 = vector.load %arg3[%c0_27, %c0_28] : memref<16x128xf32, #tpu.memory_space<vmem>>, vector<16x128xf32>
    tpu.vector_store %arg3[%c0_27, %c0_28], %36 {strides = array<i32>} : memref<16x128xf32, #tpu.memory_space<vmem>>, vector<16x128xf32>,
    return
  }
}

</mosaic_0001>

<bundles_post_ra>
// kernel: tpu_custom_call.1
= control target key start
LH: loop header
LB: loop body
LE: loop exit
PB: predicated region body
PF: predicated region fallthrough
CT: control target
= control target key end

     0   :  { %8 = vsyncpa [#allocation3], 0  ;;  %s1454_s0 = inlined_call_operand.hbm [shape: bf16[288,128], index: 0, kind: input, shape index: {}]   ;;  %s1455_s1 = inlined_call_operand.hbm [shape: bf16[512,128], index: 1, kind: input, shape index: {}]   ;;  %s1456_s2 = inlined_call_operand.hbm [shape: f32[304,128], index: 2, kind: input, shape index: {}]   ;;  %s1457_s3 = inlined_call_operand.hbm [shape: f32[16,128], index: 3, kind: output, shape index: {}]  }
   0x1   :  { %9 = vsyncpa [#allocation6], 0 }
   0x2   :  { %10 = vsyncpa [#allocation4], 0  ;;  %s1354_s12 = smov [#allocation5]   ;;  %s1355_s14 = smov [#allocation2]  }
   0x3   :  { %s28_s13 = sshll.u32 %s1354_s12, 4  ;;  %s16_s15 = sshll.u32 %s1355_s14, 4  ;;  %s29_s13 = int_to_ptr.vmem [resolvable:$true] %s28_s13  ;;  %s1384_s15 = int_to_ptr.vmem [resolvable:$true] %s16_s15 }
   0x4   :  { %s1260_s18 = scalar_lea.hbm %s1455_s1, 4096 }
   0x5   :  { %p1261_p0 = scmp.ne.s32.totalorder %s1455_s1, %s1260_s18  ;;  %p1264_p1 = scmp.lt.u32.totalorder %s1260_s18, %s1455_s1 }
   0x7   :  { %p1266_p2 = pnand %p1264_p1, %p1261_p0 }
   0x9   :  { %1269 = shalt.err (!%p1266_p2)
}
   0xa   :  { %s1270_s23 = scalar_lea.vmem %s29_s13, 4096  ;;  %p1275_p4 = scmp.lt.s32.totalorder %s29_s13, %s29_s13 }
   0xb   :  { %p1271_p3 = scmp.ne.s32.totalorder %s29_s13, %s1270_s23  ;;  %p1276_p5 = scmp.lt.s32.totalorder %s1270_s23, %s1270_s23 }
   0xd   :  { %p1277_p6 = por %p1276_p5, %p1275_p4 }
   0xf   :  { %p1278_p7 = pnand %p1277_p6, %p1271_p3 }
  0x11   :  { %1281 = shalt.err (!%p1278_p7)
}
  0x12   :  { %s1356_s24 = smov 64   ;;  %s1357_s25 = smov 4  }
  0x13   :  { %34 = dma.hbm_to_vmem [thread:$0]  %s1455_s1, 4096, %s29_s13, [#allocation6], %s1356_s24, %s1356_s24, %s1357_s25  }
  0x14   :  { %s1282_s30 = scalar_lea.hbm %s1454_s0, 2304 }
  0x15   :  { %p1283_p8 = scmp.ne.s32.totalorder %s1454_s0, %s1282_s30  ;;  %p1286_p9 = scmp.lt.u32.totalorder %s1282_s30, %s1454_s0 }
  0x17   :  { %p1288_p10 = pnand %p1286_p9, %p1283_p8 }
  0x19   :  { %1291 = shalt.err (!%p1288_p10)
}
  0x1a   :  { %s1292_s8 = scalar_lea.vmem %s1384_s15, 2304  ;;  %p1297_p12 = scmp.lt.s32.totalorder %s1384_s15, %s1384_s15 }
  0x1b   :  { %p1293_p11 = scmp.ne.s32.totalorder %s1384_s15, %s1292_s8  ;;  %p1298_p13 = scmp.lt.s32.totalorder %s1292_s8, %s1292_s8 }
  0x1d   :  { %p1299_p0 = por %p1298_p13, %p1297_p12 }
  0x1f   :  { %p1300_p1 = pnand %p1299_p0, %p1293_p11 }
  0x21   :  { %1303 = shalt.err (!%p1300_p1)
}
  0x22   :  { %22 = dma.hbm_to_vmem [thread:$0]  %s1454_s0, 2304, %s1384_s15, [#allocation3], %s1356_s24, %s1356_s24, %s1357_s25  }
  0x23   :  { %s1358_s10 = smov [#allocation7]   ;;  %s1304_s14 = scalar_lea.hbm %s1456_s2, 4864 }
  0x24   :  { %s40_s11 = sshll.u32 %s1358_s10, 4  ;;  %p1305_p2 = scmp.ne.s32.totalorder %s1456_s2, %s1304_s14  ;;  %s41_s11 = int_to_ptr.vmem [resolvable:$true] %s40_s11 }
  0x25   :  { %p1308_p3 = scmp.lt.u32.totalorder %s1304_s14, %s1456_s2 }
  0x27   :  { %p1310_p4 = pnand %p1308_p3, %p1305_p2 }
  0x29   :  { %1313 = shalt.err (!%p1310_p4)
}
  0x2a   :  { %s1314_s20 = scalar_lea.vmem %s41_s11, 4864  ;;  %p1319_p6 = scmp.lt.s32.totalorder %s41_s11, %s41_s11 }
  0x2b   :  { %p1315_p5 = scmp.ne.s32.totalorder %s41_s11, %s1314_s20  ;;  %p1320_p7 = scmp.lt.s32.totalorder %s1314_s20, %s1314_s20 }
  0x2d   :  { %p1321_p8 = por %p1320_p7, %p1319_p6 }
  0x2f   :  { %p1322_p9 = pnand %p1321_p8, %p1315_p5 }
  0x31   :  { %1325 = shalt.err (!%p1322_p9)
}
  0x32   :  { %s1359_s0 = smov 128   ;;  %s1360_s15 = smov 8  }
  0x33   :  { %46 = dma.hbm_to_vmem [thread:$0]  %s1456_s2, 4864, %s41_s11, [#allocation6], %s1359_s0, %s1359_s0, %s1360_s15  }
  0x34   :  { %1348 = dma.done.wait [#allocation3], 2304  }
  0x35   :  { %1349 = vsyncadd [#allocation3], 4294964992 }
  0x36   :  { %1350 = dma.done.wait [#allocation6], 8960  }
  0x37   :  { %1351 = vsyncadd [#allocation6], 4294958336  ;;  %v1210_v0 = vld [vmem:[#allocation5] sm:$0xff]   ;;  %v1211_v1 = vld [vmem:[#allocation5 + $0x8] sm:$0xff]   ;;  %vm1362_vm0 = vmmov 0   ;;  %s1363_s2 = smov [#allocation8]  }
  0x38   :  { %1084 = vmatprep.subr.bf16.mxu0 %v1210_v0  ;;  %v1212_v2 = vld [vmem:[#allocation5 + $0x10] sm:$0xff]   ;;  %v1213_v3 = vld [vmem:[#allocation5 + $0x18] sm:$0xff]   ;;  %v1214_v5 = vld [vmem:[#allocation5 + $0x20] sm:$0xff]   ;;  %s942_s23 = sshll.u32 %s1363_s2, 4  ;;  %s943_s23 = int_to_ptr.vmem [resolvable:$true] %s942_s23 }
  0x39   :  { %1085 = vmatpush3.bf16.msra.mxu0 %v1210_v0  ;;  %v1218_v4 = vld [vmem:[#allocation2] sm:$0xff]   ;;  %v1215_v6 = vld [vmem:[#allocation5 + $0x28] sm:$0xff]   ;;  %v1226_v7 = vld [vmem:[#allocation5 + $0x40] sm:$0xff]   ;;  %s1326_s24 = scalar_lea.vmem %s943_s23, 256  ;;  %p1331_p11 = scmp.lt.s32.totalorder %s943_s23, %s943_s23 }
  0x3a   :  { %1086 = vmatprep.subr.bf16.mxu0 %v1211_v1  ;;  %1100 = vmatprep.mubr.bf16.mxu0 %v1218_v4  ;;  %v1227_v8 = vld [vmem:[#allocation5 + $0x48] sm:$0xff]   ;;  %v1216_v9 = vld [vmem:[#allocation5 + $0x30] sm:$0xff]   ;;  %v1217_v11 = vld [vmem:[#allocation5 + $0x38] sm:$0xff]   ;;  %p1327_p10 = scmp.ne.s32.totalorder %s943_s23, %s1326_s24  ;;  %p1332_p12 = scmp.lt.s32.totalorder %s1326_s24, %s1326_s24 }
  0x3b   :  { %1116 = vmatprep.subr.bf16.mxu1 %v1226_v7  ;;  %v1228_v10 = vld [vmem:[#allocation5 + $0x50] sm:$0xff]   ;;  %v1229_v12 = vld [vmem:[#allocation5 + $0x58] sm:$0xff]   ;;  %v1230_v13 = vld [vmem:[#allocation5 + $0x60] sm:$0xff]  }
  0x3c   :  { %1117 = vmatpush3.bf16.msra.mxu1 %v1226_v7  ;;  %v1219_v14 = vld [vmem:[#allocation2 + $0x8] sm:$0xff]   ;;  %v1220_v15 = vld [vmem:[#allocation2 + $0x10] sm:$0xff]   ;;  %v1231_v16 = vld [vmem:[#allocation5 + $0x68] sm:$0xff]   ;;  %p1333_p13 = por %p1332_p12, %p1331_p11 }
  0x3d   :  { %1087 = vmatpush3.bf16.msra.mxu0 %v1211_v1  ;;  %1118 = vmatprep.subr.bf16.mxu1 %v1227_v8  ;;  %v1221_v17 = vld [vmem:[#allocation2 + $0x18] sm:$0xff]   ;;  %v1222_v18 = vld [vmem:[#allocation2 + $0x20] sm:$0xff]   ;;  %v1223_v19 = vld [vmem:[#allocation2 + $0x28] sm:$0xff]  }
  0x3e   :  { %1088 = vmatprep.subr.bf16.mxu0 %v1212_v2  ;;  %v1224_v20 = vld [vmem:[#allocation2 + $0x30] sm:$0xff]   ;;  %v1225_v21 = vld [vmem:[#allocation2 + $0x38] sm:$0xff]   ;;  %v1232_v22 = vld [vmem:[#allocation5 + $0x70] sm:$0xff]   ;;  %p1334_p0 = pnand %p1333_p13, %p1327_p10 }
  0x3f   :  { %v1233_v23 = vld [vmem:[#allocation5 + $0x78] sm:$0xff]   ;;  %v159_v24 = vld [vmem:[#allocation7 + $0x10] sm:$0xff]  ;;  %v157_v25 = vld [vmem:[#allocation7] sm:$0xff] }
  0x40   :  { %1119 = vmatpush3.bf16.msra.mxu1 %v1227_v8  ;;  %v160_v27 = vld [vmem:[#allocation7 + $0x18] sm:$0xff]  ;;  %v158_v30 = vld [vmem:[#allocation7 + $0x8] sm:$0xff]  ;;  %v163_v40 = vld [vmem:[#allocation7 + $0x30] sm:$0xff] }
  0x41   :  { %1089 = vmatpush3.bf16.msra.mxu0 %v1212_v2  ;;  %1120 = vmatprep.subr.bf16.mxu1 %v1228_v10  ;;  %v161_v42 = vld [vmem:[#allocation7 + $0x20] sm:$0xff]  ;;  %v164_v44 = vld [vmem:[#allocation7 + $0x38] sm:$0xff]  ;;  %v162_v48 = vld [vmem:[#allocation7 + $0x28] sm:$0xff] }
  0x42   :  { %1090 = vmatprep.subr.bf16.mxu0 %v1213_v3  ;;  %v167_v58 = vld [vmem:[#allocation7 + $0x50] sm:$0xff]  ;;  %v165_v60 = vld [vmem:[#allocation7 + $0x40] sm:$0xff]  ;;  %v168_v63 = vld [vmem:[#allocation7 + $0x58] sm:$0xff] }
  0x43   :  { %v166_v2 = vld [vmem:[#allocation7 + $0x48] sm:$0xff] }
  0x44   :  { %1121 = vmatpush3.bf16.msra.mxu1 %v1228_v10 }
  0x45   :  { %1091 = vmatpush3.bf16.msra.mxu0 %v1213_v3  ;;  %1122 = vmatprep.subr.bf16.mxu1 %v1229_v12 }
  0x46   :  { %1092 = vmatprep.subr.bf16.mxu0 %v1214_v5 }
  0x48   :  { %1123 = vmatpush3.bf16.msra.mxu1 %v1229_v12  ;;  %v171_v12 = vld [vmem:[#allocation7 + $0x70] sm:$0xff] }
  0x49   :  { %1093 = vmatpush3.bf16.msra.mxu0 %v1214_v5  ;;  %1124 = vmatprep.subr.bf16.mxu1 %v1230_v13 }
  0x4a   :  { %1094 = vmatprep.subr.bf16.mxu0 %v1215_v6 }
  0x4c   :  { %1125 = vmatpush3.bf16.msra.mxu1 %v1230_v13 }
  0x4d   :  { %1095 = vmatpush3.bf16.msra.mxu0 %v1215_v6  ;;  %1126 = vmatprep.subr.bf16.mxu1 %v1231_v16 }
  0x4e   :  { %1096 = vmatprep.subr.bf16.mxu0 %v1216_v9 }
  0x50   :  { %1127 = vmatpush3.bf16.msra.mxu1 %v1231_v16 }
  0x51   :  { %1097 = vmatpush3.bf16.msra.mxu0 %v1216_v9  ;;  %1128 = vmatprep.subr.bf16.mxu1 %v1232_v22 }
  0x52   :  { %1098 = vmatprep.subr.bf16.mxu0 %v1217_v11 }
  0x54   :  { %1129 = vmatpush3.bf16.msra.mxu1 %v1232_v22 }
  0x55   :  { %1099 = vmatpush3.bf16.msra.mxu0 %v1217_v11  ;;  %1130 = vmatprep.subr.bf16.mxu1 %v1233_v23 }
  0x58   :  { %1101 = vmatmul.mubr.bf16.vlgmr.msra.gmra.mrb[0].mxu0 %v1219_v14  ;;  %1131 = vmatpush3.bf16.msra.mxu1 %v1233_v23  ;;  %v169_v14 = vld [vmem:[#allocation7 + $0x60] sm:$0xff] }
  0x59   :  { %1104 = vmatprep.mubr.bf16.mxu0 %v1220_v15 }
  0x60   :  { %1105 = vmatmul.mubr.bf16.gmra.mrb[4].mxu0 %v1221_v17  ;;  %v172_v17 = vld [vmem:[#allocation7 + $0x78] sm:$0xff] }
  0x61   :  { %1108 = vmatprep.mubr.bf16.mxu0 %v1222_v18 }
  0x68   :  { %1109 = vmatmul.mubr.bf16.gmra.mrb[8].mxu0 %v1223_v19 }
  0x69   :  { %1112 = vmatprep.mubr.bf16.mxu0 %v1224_v20  ;;  %v170_v20 = vld [vmem:[#allocation7 + $0x68] sm:$0xff] }
  0x70   :  { %1113 = vmatmul.mubr.bf16.gmra.mrb[12].mxu0 %v1225_v21 }
 0x12b   :  { %v1102_v26 = vpop.f32.mrb[0].mxu0 }
 0x12c   :  { %v334_v28 = vadd.f32 %v1102_v26, %v159_v24  ;;  %v325_v29 = vpop.f32.mrb[1].mxu0 }
 0x12d   :  { %v326_v31 = vadd.f32 %v325_v29, %v157_v25  ;;  %v1103_v32 = vpop.f32.mrb[2].mxu0 }
 0x12e   :  { %v337_v33 = vadd.f32 %v1103_v32, %v160_v27  ;;  %v328_v34 = vpop.f32.mrb[3].mxu0  ;;  %v390_v36 = vmax.f32 %v334_v28, 0.0  ;;  %v1234_v32 = vld [vmem:[#allocation2 + $0x40] sm:$0xff]  }
 0x12f   :  { %v329_v35 = vadd.f32 %v328_v34, %v158_v30  ;;  %v388_v38 = vmax.f32 %v326_v31, 0.0  ;;  %1164 = vmatprep.mubr.bf16.mxu0 %v1234_v32  ;;  %v1361_v32 = vmov 0.0  }
 0x130   :  { %v391_v37 = vmax.f32 %v337_v33, 0.0  ;;  %v175_v33 = vld [vmem:[#allocation7 + $0x90] sm:$0xff]  ;;  %1180 = vmatprep.subr.bf16.mxu1 %v1361_v32 }
 0x131   :  { %v389_v39 = vmax.f32 %v329_v35, 0.0  ;;  %v176_v35 = vld [vmem:[#allocation7 + $0x98] sm:$0xff] }
 0x132   :  { %v405_v41 = vpack.c.bf16 %v391_v37, %v390_v36  ;;  %v173_v37 = vld [vmem:[#allocation7 + $0x80] sm:$0xff] }
 0x133   :  { %v1106_v43 = vpop.f32.mrb[4].mxu0  ;;  %v404_v45 = vpack.c.bf16 %v389_v39, %v388_v38  ;;  %v174_v38 = vld [vmem:[#allocation7 + $0x88] sm:$0xff] }
 0x134   :  { %v350_v46 = vadd.f32 %v1106_v43, %v163_v40  ;;  %v341_v47 = vpop.f32.mrb[5].mxu0 }
 0x135   :  { %v342_v49 = vadd.f32 %v341_v47, %v161_v42  ;;  %v1107_v50 = vpop.f32.mrb[6].mxu0  ;;  %1132 = vmatprep.mubr.bf16.mxu1 %v404_v45  ;;  %v179_v47 = vld [vmem:[#allocation7 + $0xb0] sm:$0xff] }
 0x136   :  { %v353_v51 = vadd.f32 %v1107_v50, %v164_v44  ;;  %v344_v52 = vpop.f32.mrb[7].mxu0  ;;  %1133 = vmatmul.mubr.bf16.vlgmr.msra.gmra.mrb[0].mxu1 %v405_v41  ;;  %v394_v54 = vmax.f32 %v350_v46, 0.0 }
 0x137   :  { %v345_v53 = vadd.f32 %v344_v52, %v162_v48  ;;  %v392_v56 = vmax.f32 %v342_v49, 0.0  ;;  %v180_v49 = vld [vmem:[#allocation7 + $0xb8] sm:$0xff]  ;;  %v178_v52 = vld [vmem:[#allocation7 + $0xa8] sm:$0xff] }
 0x138   :  { %v395_v55 = vmax.f32 %v353_v51, 0.0  ;;  %v177_v51 = vld [vmem:[#allocation7 + $0xa0] sm:$0xff] }
 0x139   :  { %v393_v57 = vmax.f32 %v345_v53, 0.0 }
 0x13a   :  { %v407_v59 = vpack.c.bf16 %v395_v55, %v394_v54 }
 0x13b   :  { %v406_v61 = vpack.c.bf16 %v393_v57, %v392_v56  ;;  %v1110_v62 = vpop.f32.mrb[8].mxu0 }
 0x13c   :  { %v366_v0 = vadd.f32 %v1110_v62, %v167_v58  ;;  %v357_v1 = vpop.f32.mrb[9].mxu0 }
 0x13d   :  { %v358_v3 = vadd.f32 %v357_v1, %v165_v60  ;;  %v1111_v4 = vpop.f32.mrb[10].mxu0  ;;  %1136 = vmatprep.mubr.bf16.mxu1 %v406_v61  ;;  %v183_v61 = vld [vmem:[#allocation7 + $0xd0] sm:$0xff]  ;;  %v181_v1 = vld [vmem:[#allocation7 + $0xc0] sm:$0xff] }
 0x13e   :  { %v369_v5 = vadd.f32 %v1111_v4, %v168_v63  ;;  %v360_v6 = vpop.f32.mrb[11].mxu0  ;;  %1137 = vmatmul.mubr.bf16.gmra.mrb[4].mxu1 %v407_v59  ;;  %v398_v8 = vmax.f32 %v366_v0, 0.0  ;;  %v184_v63 = vld [vmem:[#allocation7 + $0xd8] sm:$0xff] }
 0x13f   :  { %v361_v7 = vadd.f32 %v360_v6, %v166_v2  ;;  %v396_v10 = vmax.f32 %v358_v3, 0.0  ;;  %v182_v2 = vld [vmem:[#allocation7 + $0xc8] sm:$0xff] }
 0x140   :  { %v399_v9 = vmax.f32 %v369_v5, 0.0 }
 0x141   :  { %v397_v11 = vmax.f32 %v361_v7, 0.0 }
 0x142   :  { %v409_v13 = vpack.c.bf16 %v399_v9, %v398_v8 }
 0x143   :  { %v408_v15 = vpack.c.bf16 %v397_v11, %v396_v10  ;;  %v1114_v16 = vpop.f32.mrb[12].mxu0  ;;  %v187_v11 = vld [vmem:[#allocation7 + $0xf0] sm:$0xff] }
 0x144   :  { %v382_v18 = vadd.f32 %v1114_v16, %v171_v12  ;;  %v373_v19 = vpop.f32.mrb[13].mxu0  ;;  %v186_v16 = vld [vmem:[#allocation7 + $0xe8] sm:$0xff] }
 0x145   :  { %v374_v21 = vadd.f32 %v373_v19, %v169_v14  ;;  %v1115_v22 = vpop.f32.mrb[14].mxu0  ;;  %1140 = vmatprep.mubr.bf16.mxu1 %v408_v15  ;;  %v185_v15 = vld [vmem:[#allocation7 + $0xe0] sm:$0xff] }
 0x146   :  { %v385_v23 = vadd.f32 %v1115_v22, %v172_v17  ;;  %v376_v24 = vpop.f32.mrb[15].mxu0  ;;  %1141 = vmatmul.mubr.bf16.gmra.mrb[8].mxu1 %v409_v13  ;;  %v402_v26 = vmax.f32 %v382_v18, 0.0  ;;  %v188_v13 = vld [vmem:[#allocation7 + $0xf8] sm:$0xff] }
 0x147   :  { %v377_v25 = vadd.f32 %v376_v24, %v170_v20  ;;  %v400_v28 = vmax.f32 %v374_v21, 0.0 }
 0x148   :  { %v403_v27 = vmax.f32 %v385_v23, 0.0 }
 0x149   :  { %v401_v29 = vmax.f32 %v377_v25, 0.0  ;;  %v1235_v25 = vld [vmem:[#allocation2 + $0x48] sm:$0xff]  }
 0x14a   :  { %v411_v30 = vpack.c.bf16 %v403_v27, %v402_v26  ;;  %v1236_v26 = vld [vmem:[#allocation2 + $0x50] sm:$0xff]   ;;  %v1237_v27 = vld [vmem:[#allocation2 + $0x58] sm:$0xff]  }
 0x14b   :  { %v410_v31 = vpack.c.bf16 %v401_v29, %v400_v28  ;;  %v1238_v28 = vld [vmem:[#allocation2 + $0x60] sm:$0xff]   ;;  %v1239_v29 = vld [vmem:[#allocation2 + $0x68] sm:$0xff]  }
 0x14d   :  { %1144 = vmatprep.mubr.bf16.mxu1 %v410_v31  ;;  %v1241_v31 = vld [vmem:[#allocation2 + $0x78] sm:$0xff]  }
 0x14e   :  { %1145 = vmatmul.mubr.bf16.gmra.mrb[12].mxu1 %v411_v30  ;;  %v1240_v30 = vld [vmem:[#allocation2 + $0x70] sm:$0xff]  }
 0x14f   :  { %1196 = vmatprep.mubr.msk.bf16.mxu1 %vm1362_vm0, %v1361_v32 }
 0x209   :  { %v1134_v34 = vpop.f32.mrb[0].mxu1 }
 0x20a   :  { %v494_v36 = vpop.f32.mrb[1].mxu1  ;;  %v503_v40 = vadd.f32 %v1134_v34, %v175_v33  ;;  %v1243_v33 = vld [vmem:[#allocation5 + $0xc0] sm:$0xff]  }
 0x20b   :  { %v1135_v39 = vpop.f32.mrb[2].mxu1  ;;  %v495_v43 = vadd.f32 %v494_v36, %v173_v37  ;;  %v1244_v34 = vld [vmem:[#allocation5 + $0x80] sm:$0xff]   ;;  %v1246_v36 = vld [vmem:[#allocation5 + $0x88] sm:$0xff]   ;;  %v1247_v37 = vld [vmem:[#allocation5 + $0xd0] sm:$0xff]  }
 0x20c   :  { %v506_v41 = vadd.f32 %v1135_v39, %v176_v35  ;;  %v497_v42 = vpop.f32.mrb[3].mxu1  ;;  %v1245_v35 = vld [vmem:[#allocation5 + $0xc8] sm:$0xff]   ;;  %v1249_v39 = vld [vmem:[#allocation5 + $0xd8] sm:$0xff]  }
 0x20d   :  { %v498_v44 = vadd.f32 %v497_v42, %v174_v38  ;;  %v1248_v38 = vld [vmem:[#allocation5 + $0x90] sm:$0xff]   ;;  %v1252_v42 = vld [vmem:[#allocation5 + $0xa0] sm:$0xff]  }
 0x20e   :  { %v558_v45 = vpack.c.bf16 %v506_v41, %v503_v40  ;;  %v1250_v40 = vld [vmem:[#allocation5 + $0x98] sm:$0xff]   ;;  %v1251_v41 = vld [vmem:[#allocation5 + $0xe0] sm:$0xff]  }
 0x20f   :  { %v557_v46 = vpack.c.bf16 %v498_v44, %v495_v43  ;;  %v1253_v43 = vld [vmem:[#allocation5 + $0xe8] sm:$0xff]  }
 0x210   :  { %v1254_v44 = vld [vmem:[#allocation5 + $0xa8] sm:$0xff]  }
 0x211   :  { %v1138_v48 = vpop.f32.mrb[4].mxu1  ;;  %1148 = vmatprep.subr.bf16.mxu0 %v557_v46 }
 0x212   :  { %v510_v50 = vpop.f32.mrb[5].mxu1  ;;  %1149 = vmatpush3.bf16.msra.mxu0 %v557_v46  ;;  %v519_v54 = vadd.f32 %v1138_v48, %v179_v47  ;;  %v1256_v46 = vld [vmem:[#allocation5 + $0xb0] sm:$0xff]  }
 0x213   :  { %v1139_v53 = vpop.f32.mrb[6].mxu1  ;;  %1150 = vmatprep.subr.bf16.mxu0 %v558_v45  ;;  %v511_v57 = vadd.f32 %v510_v50, %v177_v51 }
 0x214   :  { %v522_v55 = vadd.f32 %v1139_v53, %v180_v49  ;;  %v513_v56 = vpop.f32.mrb[7].mxu1 }
 0x215   :  { %v514_v58 = vadd.f32 %v513_v56, %v178_v52 }
 0x216   :  { %v560_v59 = vpack.c.bf16 %v522_v55, %v519_v54  ;;  %1151 = vmatpush3.bf16.msra.mxu0 %v558_v45  ;;  %v1255_v45 = vld [vmem:[#allocation5 + $0xf0] sm:$0xff]  }
 0x217   :  { %v559_v60 = vpack.c.bf16 %v514_v58, %v511_v57 }
 0x219   :  { %v1142_v62 = vpop.f32.mrb[8].mxu1  ;;  %1152 = vmatprep.subr.bf16.mxu0 %v559_v60 }
 0x21a   :  { %v526_v0 = vpop.f32.mrb[9].mxu1  ;;  %1153 = vmatpush3.bf16.msra.mxu0 %v559_v60  ;;  %v535_v4 = vadd.f32 %v1142_v62, %v183_v61 }
 0x21b   :  { %v1143_v3 = vpop.f32.mrb[10].mxu1  ;;  %1154 = vmatprep.subr.bf16.mxu0 %v560_v59  ;;  %v527_v7 = vadd.f32 %v526_v0, %v181_v1 }
 0x21c   :  { %v538_v5 = vadd.f32 %v1143_v3, %v184_v63  ;;  %v529_v6 = vpop.f32.mrb[11].mxu1 }
 0x21d   :  { %v530_v8 = vadd.f32 %v529_v6, %v182_v2 }
 0x21e   :  { %v562_v9 = vpack.c.bf16 %v538_v5, %v535_v4  ;;  %1155 = vmatpush3.bf16.msra.mxu0 %v560_v59 }
 0x21f   :  { %v561_v10 = vpack.c.bf16 %v530_v8, %v527_v7 }
 0x221   :  { %v1146_v12 = vpop.f32.mrb[12].mxu1  ;;  %1156 = vmatprep.subr.bf16.mxu0 %v561_v10 }
 0x222   :  { %v542_v14 = vpop.f32.mrb[13].mxu1  ;;  %1157 = vmatpush3.bf16.msra.mxu0 %v561_v10  ;;  %v551_v18 = vadd.f32 %v1146_v12, %v187_v11 }
 0x223   :  { %v1147_v17 = vpop.f32.mrb[14].mxu1  ;;  %1158 = vmatprep.subr.bf16.mxu0 %v562_v9  ;;  %v543_v21 = vadd.f32 %v542_v14, %v185_v15 }
 0x224   :  { %v554_v19 = vadd.f32 %v1147_v17, %v188_v13  ;;  %v545_v20 = vpop.f32.mrb[15].mxu1 }
 0x225   :  { %v546_v22 = vadd.f32 %v545_v20, %v186_v16 }
 0x226   :  { %v564_v23 = vpack.c.bf16 %v554_v19, %v551_v18  ;;  %1159 = vmatpush3.bf16.msra.mxu0 %v562_v9 }
 0x227   :  { %v563_v24 = vpack.c.bf16 %v546_v22, %v543_v21 }
 0x229   :  { %1160 = vmatprep.subr.bf16.mxu0 %v563_v24 }
 0x22a   :  { %1161 = vmatpush3.bf16.msra.mxu0 %v563_v24  ;;  %v1257_v24 = vld [vmem:[#allocation5 + $0xf8] sm:$0xff]  }
 0x22b   :  { %1162 = vmatprep.subr.bf16.mxu0 %v564_v23 }
 0x22e   :  { %1163 = vmatpush3.bf16.msra.mxu0 %v564_v23  ;;  %v1242_v23 = vld [vmem:[#allocation2 + $0x80] sm:$0xff]  }
 0x22f   :  { %1062 = vmatprep.subr.bf16.mxu0 %v1243_v33 }
 0x231   :  { %1165 = vmatmul.mubr.bf16.vlgmr.msra.gmra.mrb[16].mxu0 %v1235_v25  ;;  %v1258_v25 = vld [vmem:[#allocation5 + $0xb8] sm:$0xff]  }
 0x232   :  { %1168 = vmatprep.mubr.bf16.mxu0 %v1236_v26  ;;  %1063 = vmatpush3.bf16.msra.mxu0 %v1244_v34  ;;  %v1259_v26 = vld [vmem:[#allocation2 + $0x88] sm:$0xff]  }
 0x233   :  { %1064 = vmatprep.subr.bf16.mxu0 %v1245_v35  ;;  %v189_v35 = vld [vmem:[#allocation7 + $0x100] sm:$0xff] }
 0x236   :  { %1065 = vmatpush3.bf16.msra.mxu0 %v1246_v36 }
 0x237   :  { %1066 = vmatprep.subr.bf16.mxu0 %v1247_v37  ;;  %v190_v37 = vld [vmem:[#allocation7 + $0x108] sm:$0xff] }
 0x239   :  { %1169 = vmatmul.mubr.bf16.gmra.mrb[20].mxu0 %v1237_v27 }
 0x23a   :  { %1172 = vmatprep.mubr.bf16.mxu0 %v1238_v28  ;;  %1067 = vmatpush3.bf16.msra.mxu0 %v1248_v38 }
 0x23b   :  { %1068 = vmatprep.subr.bf16.mxu0 %v1249_v39 }
 0x23e   :  { %1069 = vmatpush3.bf16.msra.mxu0 %v1250_v40 }
 0x23f   :  { %1070 = vmatprep.subr.bf16.mxu0 %v1251_v41  ;;  %v191_v41 = vld [vmem:[#allocation7 + $0x110] sm:$0xff] }
 0x241   :  { %1173 = vmatmul.mubr.bf16.gmra.mrb[24].mxu0 %v1239_v29 }
 0x242   :  { %1176 = vmatprep.mubr.bf16.mxu0 %v1240_v30  ;;  %1071 = vmatpush3.bf16.msra.mxu0 %v1252_v42 }
 0x243   :  { %1072 = vmatprep.subr.bf16.mxu0 %v1253_v43 }
 0x246   :  { %1073 = vmatpush3.bf16.msra.mxu0 %v1254_v44 }
 0x247   :  { %1074 = vmatprep.subr.bf16.mxu0 %v1255_v45 }
 0x249   :  { %1177 = vmatmul.mubr.bf16.gmra.mrb[28].mxu0 %v1241_v31 }
 0x24a   :  { %1075 = vmatpush3.bf16.msra.mxu0 %v1256_v46  ;;  %916 = vmatprep.mubr.bf16.mxu0 %v1259_v26  ;;  %v192_v46 = vld [vmem:[#allocation7 + $0x118] sm:$0xff] }
 0x24b   :  { %1076 = vmatprep.subr.bf16.mxu0 %v1257_v24 }
 0x24e   :  { %1077 = vmatpush3.bf16.msra.mxu0 %v1258_v25 }
 0x304   :  { %v1166_v47 = vpop.f32.mrb[16].mxu0 }
 0x305   :  { %v647_v48 = vpop.f32.mrb[17].mxu0  ;;  %v712_v50 = vmax.f32 %v1166_v47, 0.0 }
 0x306   :  { %v1167_v49 = vpop.f32.mrb[18].mxu0  ;;  %v710_v53 = vmax.f32 %v647_v48, 0.0  ;;  %v193_v48 = vld [vmem:[#allocation7 + $0x120] sm:$0xff] }
 0x307   :  { %v713_v51 = vmax.f32 %v1167_v49, 0.0  ;;  %v650_v52 = vpop.f32.mrb[19].mxu0 }
 0x308   :  { %v711_v54 = vmax.f32 %v650_v52, 0.0 }
 0x309   :  { %v727_v55 = vpack.c.bf16 %v713_v51, %v712_v50  ;;  %v194_v51 = vld [vmem:[#allocation7 + $0x128] sm:$0xff] }
 0x30a   :  { %v726_v56 = vpack.c.bf16 %v711_v54, %v710_v53 }
 0x30c   :  { %v1170_v57 = vpop.f32.mrb[20].mxu0  ;;  %1181 = vmatpush3.bf16.msra.mxu1 %v726_v56 }
 0x30d   :  { %v663_v58 = vpop.f32.mrb[21].mxu0  ;;  %1182 = vmatprep.subr.bf16.mxu1 %v1361_v32  ;;  %v716_v60 = vmax.f32 %v1170_v57, 0.0 }
 0x30e   :  { %v1171_v59 = vpop.f32.mrb[22].mxu0  ;;  %v714_v63 = vmax.f32 %v663_v58, 0.0 }
 0x30f   :  { %v717_v61 = vmax.f32 %v1171_v59, 0.0  ;;  %v666_v62 = vpop.f32.mrb[23].mxu0 }
 0x310   :  { %v715_v0 = vmax.f32 %v666_v62, 0.0  ;;  %1183 = vmatpush3.bf16.msra.mxu1 %v727_v55 }
 0x311   :  { %v729_v1 = vpack.c.bf16 %v717_v61, %v716_v60  ;;  %1184 = vmatprep.subr.bf16.mxu1 %v1361_v32 }
 0x312   :  { %v728_v2 = vpack.c.bf16 %v715_v0, %v714_v63 }
 0x314   :  { %v1174_v3 = vpop.f32.mrb[24].mxu0  ;;  %1185 = vmatpush3.bf16.msra.mxu1 %v728_v2 }
 0x315   :  { %v679_v4 = vpop.f32.mrb[25].mxu0  ;;  %1186 = vmatprep.subr.bf16.mxu1 %v1361_v32  ;;  %v720_v6 = vmax.f32 %v1174_v3, 0.0 }
 0x316   :  { %v1175_v5 = vpop.f32.mrb[26].mxu0  ;;  %v718_v9 = vmax.f32 %v679_v4, 0.0 }
 0x317   :  { %v721_v7 = vmax.f32 %v1175_v5, 0.0  ;;  %v682_v8 = vpop.f32.mrb[27].mxu0 }
 0x318   :  { %v719_v10 = vmax.f32 %v682_v8, 0.0  ;;  %1187 = vmatpush3.bf16.msra.mxu1 %v729_v1 }
 0x319   :  { %v731_v11 = vpack.c.bf16 %v721_v7, %v720_v6  ;;  %1188 = vmatprep.subr.bf16.mxu1 %v1361_v32 }
 0x31a   :  { %v730_v12 = vpack.c.bf16 %v719_v10, %v718_v9 }
 0x31c   :  { %v1178_v13 = vpop.f32.mrb[28].mxu0  ;;  %1189 = vmatpush3.bf16.msra.mxu1 %v730_v12 }
 0x31d   :  { %v695_v14 = vpop.f32.mrb[29].mxu0  ;;  %1190 = vmatprep.subr.bf16.mxu1 %v1361_v32  ;;  %v724_v16 = vmax.f32 %v1178_v13, 0.0 }
 0x31e   :  { %v1179_v15 = vpop.f32.mrb[30].mxu0  ;;  %v722_v19 = vmax.f32 %v695_v14, 0.0 }
 0x31f   :  { %v725_v17 = vmax.f32 %v1179_v15, 0.0  ;;  %v698_v18 = vpop.f32.mrb[31].mxu0 }
 0x320   :  { %v723_v20 = vmax.f32 %v698_v18, 0.0  ;;  %1191 = vmatpush3.bf16.msra.mxu1 %v731_v11 }
 0x321   :  { %v733_v21 = vpack.c.bf16 %v725_v17, %v724_v16  ;;  %1192 = vmatprep.subr.bf16.mxu1 %v1361_v32 }
 0x322   :  { %v732_v22 = vpack.c.bf16 %v723_v20, %v722_v19 }
 0x324   :  { %1193 = vmatpush3.bf16.msra.mxu1 %v732_v22 }
 0x325   :  { %1194 = vmatprep.subr.bf16.mxu1 %v1361_v32 }
 0x328   :  { %1195 = vmatpush3.bf16.msra.mxu1 %v733_v21 }
 0x32b   :  { %1197 = vmatmul.mubr.bf16.vlgmr.msra.gmra.mrb[16].mxu1 %v1242_v23 }
 0x3fe   :  { %v774_v27 = vpop.f32.mrb[16].mxu1 }
 0x3ff   :  { %v1198_v28 = vpop.f32.mrb[17].mxu1 }
 0x400   :  { %v777_v29 = vpop.f32.mrb[18].mxu1 }
 0x401   :  { %v781_v30 = vpack.c.bf16 %v777_v29, %v774_v27  ;;  %v1199_v31 = vpop.f32.mrb[19].mxu1 }
 0x403   :  { %917 = vmatmul.mubr.bf16.vlgmr.msra.gmra.mrb[32].mxu0 %v781_v30 }
 0x4d6   :  { %v1078_v33 = vpop.f32.mrb[32].mxu0 }
 0x4d7   :  { %v1079_v34 = vpop.f32.mrb[33].mxu0 }
 0x4d8   :  { %v1080_v36 = vadd.f32 %v1079_v34, %v1078_v33  ;;  %v1081_v32 = vpop.f32.mrb[34].mxu0 }
 0x4d9   :  { %v1082_v38 = vpop.f32.mrb[35].mxu0 }
 0x4da   :  { %v1083_v39 = vadd.f32 %v1082_v38, %v1081_v32  ;;  %v919_v40 = vadd.f32 %v1080_v36, %v189_v35 }
 0x4dc   :  { %v922_v42 = vadd.f32 %v1083_v39, %v190_v37  ;;  %v925_v43 = vmax.f32 %v919_v40, 0.0 }
 0x4de   :  { %v926_v44 = vmax.f32 %v922_v42, 0.0  ;;  %v927_v45 = vmul.f32 %v925_v43, %v191_v41 }
 0x4e0   :  { %929 = vadd.xlane.f32.xlu0 %v927_v45  ;;  %v928_v47 = vmul.f32 %v926_v44, %v192_v46 }
 0x4e4   :  { %931 = vadd.xlane.f32.xlu0 %v928_v47 }
 0x56d   :  { %v930_v49 = vpop.xlane.xlu0 %929 }
 0x56e   :  { %v933_v50 = vadd.f32 %v930_v49, %v193_v48 }
 0x570   :  { %935 = vst [vmem:[#allocation8] sm:$0xff] %v933_v50 }
 0x571   :  { %v932_v52 = vpop.xlane.xlu0 %931 }
 0x572   :  { %v934_v53 = vadd.f32 %v932_v52, %v194_v51 }
 0x574   :  { %936 = vst [vmem:[#allocation8 + $0x8] sm:$0xff] %v934_v53 }
 0x575   :  { %1337 = shalt.err (!%p1334_p0)
}
 0x576   :  { %s1338_s27 = scalar_lea.hbm %s1457_s3, 256 }
 0x577   :  { %p1339_p1 = scmp.ne.s32.totalorder %s1457_s3, %s1338_s27  ;;  %p1342_p2 = scmp.lt.u32.totalorder %s1338_s27, %s1457_s3 }
 0x579   :  { %p1344_p3 = pnand %p1342_p2, %p1339_p1 }
 0x57b   :  { %1347 = shalt.err (!%p1344_p3)
}
 0x57c   :  { %948 = dma.vmem_to_hbm [thread:$0]  %s943_s23, 256, %s1457_s3, [#allocation4], %s1359_s0, %s1359_s0, %s1360_s15  }
 0x57d   :  { %1352 = dma.done.wait [#allocation4], 256  }
 0x57e   :  { %1353 = vsyncadd [#allocation4], 4294967040 }
 0x57f   :  { %952 = vsyncpa [#allocation3], 1 }
 0x580   :  { %953 = vsyncpa [#allocation6], 1 }
 0x581   :  { %954 = vsyncpa [#allocation4], 1 }

</bundles_post_ra>
